<compile_context>
chip_gen: v5e
topology: v5e:2x2
jax: 0.10.0
libtpu: 0.0.40
codegen_flags: <defaults>
</compile_context>

<pallas_src>
import functools

import jax
import jax.numpy as jnp
from jax.experimental import pallas as pl
from jax.experimental.pallas import tpu as pltpu


def _interp_matrix(in_size: int, out_size: int):
    """Row-stochastic interpolation matrix matching F.interpolate(align_corners=False)."""
    o = jnp.arange(out_size, dtype=jnp.float32)
    src = (o + 0.5) * (in_size / out_size) - 0.5
    src = jnp.maximum(src, 0.0)  # PyTorch clamps negative source coords to 0
    i0 = jnp.minimum(jnp.floor(src).astype(jnp.int32), in_size - 1)
    i1 = jnp.minimum(i0 + 1, in_size - 1)
    frac = src - i0.astype(jnp.float32)
    rows = jnp.arange(out_size)
    A = jnp.zeros((out_size, in_size), jnp.float32)
    A = A.at[rows, i0].add(1.0 - frac)
    A = A.at[rows, i1].add(frac)
    return A


def _vmem_capacity_bytes():
    """Per-core VMEM capacity; conservative default (v7x) if query unavailable."""
    try:
        return int(pltpu.get_tpu_info().vmem_capacity_bytes)
    except Exception:
        return 64 * 1024 * 1024


def _round_up(x, m):
    return (x + m - 1) // m * m


def _block_vmem_bytes(cb, H, W, Wout, in_isz, out_isz):
    """Conservative VMEM footprint of one grid step (windows lane-padded to 128)."""
    rows = _round_up(cb * H, 8)
    lane_in = _round_up(W, 128)
    lane_out = _round_up(2 * Wout, 128)
    win_in = 2 * rows * lane_in * in_isz          # double-buffered input window
    win_out = 2 * rows * lane_out * out_isz       # double-buffered output window
    # f32 temporaries: x, x_prev, x_next, he, ho, z (~6 input-sized) + out (~1 output-sized)
    tmp = rows * lane_in * 4 * 6 + rows * lane_out * 4
    wgt = 2 * _round_up(2 * W, 8) * _round_up(2 * Wout, 128) * 4
    return win_in + win_out + tmp + wgt


def _pick_cb(NC, H, W, Wout, in_isz, out_isz, budget):
    """Largest layout-legal channel block that fits VMEM, preferring even >=4 grid steps."""
    cands = [cb for cb in range(1, NC + 1)
             if NC % cb == 0 and ((cb * H) % 8 == 0 or cb == NC)]
    fitting = [cb for cb in cands
               if _block_vmem_bytes(cb, H, W, Wout, in_isz, out_isz) <= budget]
    if not fitting:
        # TODO(synk): row-tile within a channel for very large H*W images; for now
        # fall back to the smallest legal block (may be VMEM-tight at compile time).
        return min(cands, key=lambda cb: _block_vmem_bytes(cb, H, W, Wout, in_isz, out_isz))
    for pred in (lambda s: s % 2 == 0 and s >= 4,   # v7x megacore balance + pipelining
                 lambda s: s >= 2,                  # at least some DMA/compute overlap
                 lambda s: True):
        ok = [cb for cb in fitting if pred(NC // cb)]
        if ok:
            return max(ok)
    return max(fitting)


def _upscale2x_kernel(x_ref, aw2_ref, o_ref, *, h_in):
    # x_ref:   (Cb*H, W)        -- Cb channels stacked along rows (natural NCHW view)
    # aw2_ref: (2*W, 2*Wout)    -- blockdiag(AwT, AwT), tiny, grid-invariant
    # o_ref:   (Cb*H, 2*Wout)   -- row i holds [output row 2i | output row 2i+1]
    rows, w = x_ref.shape
    x = x_ref[...].astype(jnp.float32)

    # Clamped +/-1 row shifts; each H-row group is an independent image (channel).
    x_prev = jnp.concatenate([x[:1, :], x[:-1, :]], axis=0)
    x_next = jnp.concatenate([x[1:, :], x[-1:, :]], axis=0)
    rid = jax.lax.broadcasted_iota(jnp.int32, (rows, w), 0)
    x_prev = jnp.where((rid % h_in) == 0, x, x_prev)          # clamp at channel top row
    x_next = jnp.where((rid % h_in) == (h_in - 1), x, x_next)  # clamp at channel bottom row

    he = 0.75 * x + 0.25 * x_prev   # output rows 2i   (VPU)
    ho = 0.75 * x + 0.25 * x_next   # output rows 2i+1 (VPU)

    # One MXU matmul does width blend + clamp + column interleave for both parities.
    z = jnp.concatenate([he, ho], axis=1)                       # (rows, 2W)
    out = jnp.dot(z, aw2_ref[...], preferred_element_type=jnp.float32)  # (rows, 2*Wout)
    o_ref[...] = out.astype(o_ref.dtype)


def upscale_bilinear(x, scale_factor=(2, 2)):
    """x: (N, C, H, W) -> (N, C, 2H, 2W), bilinear, align_corners=False."""
    if tuple(scale_factor) != (2, 2):
        # TODO(synk): general scale factors / other interpolation modes not implemented.
        raise NotImplementedError("This kernel implements the module default scale_factor=(2, 2).")

    N, C, H, W = x.shape
    Hout, Wout = 2 * H, 2 * W
    NC = N * C
    isz = jnp.dtype(x.dtype).itemsize

    vmem_cap = _vmem_capacity_bytes()
    vmem_limit = min(int(vmem_cap * 3 // 4), 96 * 1024 * 1024)
    Cb = _pick_cb(NC, H, W, Wout, isz, isz, vmem_limit - (4 << 20))

    # Width interpolation weight: blockdiag(AwT, AwT), a few KB, independent of Cb.
    AwT = _interp_matrix(W, Wout).T                              # (W, Wout) f32
    Aw2 = jnp.kron(jnp.eye(2, dtype=jnp.float32), AwT)           # (2W, 2Wout)

    x2 = x.reshape(NC * H, W)  # free reshape, natural NCHW flattening

    out2 = pl.pallas_call(
        functools.partial(_upscale2x_kernel, h_in=H),
        out_shape=jax.ShapeDtypeStruct((NC * H, 2 * Wout), x.dtype),
        grid_spec=pltpu.PrefetchScalarGridSpec(
            num_scalar_prefetch=0,
            grid=(NC // Cb,),
            in_specs=[
                pl.BlockSpec((Cb * H, W), lambda i: (i, 0)),
                pl.BlockSpec((2 * W, 2 * Wout), lambda i: (0, 0)),  # grid-invariant weight
            ],
            out_specs=pl.BlockSpec((Cb * H, 2 * Wout), lambda i: (i, 0)),
        ),
        compiler_params=pltpu.CompilerParams(
            dimension_semantics=("parallel",),
            vmem_limit_bytes=vmem_limit,
        ),
    )(x2, Aw2)

    # (NC*H, 2*Wout) is byte-identical to (N, C, Hout, Wout): row i holds
    # output rows (2i, 2i+1) back-to-back, so this reshape is free.
    return out2.reshape(N, C, Hout, Wout)


def _ref_bilinear(x, scale_factor=(2, 2)):
    """Pure-JAX gather-based reference (same math as PyTorch align_corners=False)."""
    N, C, H, W = x.shape
    Hout, Wout = int(H * scale_factor[0]), int(W * scale_factor[1])

    def src_idx(out_size, in_size):
        o = jnp.arange(out_size, dtype=jnp.float32)
        s = jnp.maximum((o + 0.5) * (in_size / out_size) - 0.5, 0.0)
        i0 = jnp.minimum(jnp.floor(s).astype(jnp.int32), in_size - 1)
        i1 = jnp.minimum(i0 + 1, in_size - 1)
        f = s - i0.astype(jnp.float32)
        return i0, i1, f

    h0, h1, fh = src_idx(Hout, H)
    w0, w1, fw = src_idx(Wout, W)
    xh = (x[:, :, h0, :] * (1.0 - fh)[None, None, :, None]
          + x[:, :, h1, :] * fh[None, None, :, None])
    out = xh[:, :, :, w0] * (1.0 - fw) + xh[:, :, :, w1] * fw
    return out


if __name__ == "__main__":
    key = jax.random.PRNGKey(0)
    N, C, H, W = 2, 4, 16, 16
    x = jax.random.normal(key, (N, C, H, W), dtype=jnp.float32)

    y = upscale_bilinear(x, scale_factor=(2, 2))
    y = jax.block_until_ready(y)

    assert y.shape == (N, C, 2 * H, 2 * W), y.shape

    y_ref = _ref_bilinear(x, (2, 2))
    err = float(jnp.max(jnp.abs(y - y_ref)))
    assert jnp.allclose(y, y_ref, atol=1e-4, rtol=1e-4), err

    print("KERNEL_OK")
</pallas_src>

<mosaic_0001>
module attributes {stable_mosaic.version = 11 : i64} {
  func.func @_upscale2x_kernel(%arg0: i32, %arg1: memref<32x16xf32, #tpu.memory_space<vmem>>, %arg2: memref<32x64xf32, #tpu.memory_space<vmem>>, %arg3: memref<32x64xf32, #tpu.memory_space<vmem>>) attributes {dimension_semantics = [#tpu.dimension_semantics<parallel>], iteration_bounds = array<i64: 4>, scalar_prefetch = 0 : i64, scratch_operands = 0 : i64, tpu.core_type = #tpu.core_type<tc>, window_params = [{transform_indices = @transform_0, window_bounds = array<i64: 32, 16>}, {pipeline_mode = #tpu.pipeline_mode<synchronous>, transform_indices = @transform_1, window_bounds = array<i64: 32, 64>}, {transform_indices = @transform_2, window_bounds = array<i64: 32, 64>}]} {
    %c0 = arith.constant 0 : index
    %c0_0 = arith.constant 0 : index
    %0 = vector.load %arg1[%c0, %c0_0] : memref<32x16xf32, #tpu.memory_space<vmem>>, vector<32x16xf32>
    %1 = vector.extract_strided_slice %0 {offsets = [0, 0], sizes = [1, 16], strides = [1, 1]} : vector<32x16xf32> to vector<1x16xf32>
    %2 = vector.extract_strided_slice %0 {offsets = [0, 0], sizes = [31, 16], strides = [1, 1]} : vector<32x16xf32> to vector<31x16xf32>
    %3 = tpu.concatenate %1, %2 in 0 : vector<1x16xf32>, vector<31x16xf32> -> vector<32x16xf32>
    %4 = vector.extract_strided_slice %0 {offsets = [1, 0], sizes = [31, 16], strides = [1, 1]} : vector<32x16xf32> to vector<31x16xf32>
    %5 = vector.extract_strided_slice %0 {offsets = [31, 0], sizes = [1, 16], strides = [1, 1]} : vector<32x16xf32> to vector<1x16xf32>
    %6 = tpu.concatenate %4, %5 in 0 : vector<31x16xf32>, vector<1x16xf32> -> vector<32x16xf32>
    %7 = tpu.iota {dimensions = array<i32: 0>} : vector<32x16xi32>
    %c16_i32 = arith.constant 16 : i32
    %c0_i32 = arith.constant 0 : i32
    %8 = arith.cmpi eq, %c16_i32, %c0_i32 : i32
    %c1_i32 = arith.constant 1 : i32
    %9 = arith.select %8, %c1_i32, %c16_i32 : i32
    %10 = vector.broadcast %9 : i32 to vector<32x16xi32>
    %11 = arith.remsi %7, %10 : vector<32x16xi32>
    %c0_i32_1 = arith.constant 0 : i32
    %12 = vector.broadcast %c0_i32_1 : i32 to vector<32x16xi32>
    %13 = arith.cmpi ne, %11, %12 : vector<32x16xi32>
    %c0_i32_2 = arith.constant 0 : i32
    %14 = vector.broadcast %c0_i32_2 : i32 to vector<32x16xi32>
    %15 = arith.cmpi slt, %11, %14 : vector<32x16xi32>
    %c0_i32_3 = arith.constant 0 : i32
    %16 = arith.cmpi slt, %9, %c0_i32_3 : i32
    %17 = vector.broadcast %16 : i1 to vector<32x16xi1>
    %18 = vector.broadcast %17 : vector<32x16xi1> to vector<32x16xi1>
    %19 = arith.xori %15, %18 : vector<32x16xi1>
    %20 = arith.andi %19, %13 : vector<32x16xi1>
    %21 = vector.broadcast %9 : i32 to vector<32x16xi32>
    %22 = arith.addi %11, %21 : vector<32x16xi32>
    %23 = arith.select %20, %22, %11 : vector<32x16xi1>, vector<32x16xi32>
    %c0_i32_4 = arith.constant 0 : i32
    %24 = vector.broadcast %c0_i32_4 : i32 to vector<32x16xi32>
    %25 = arith.cmpi eq, %23, %24 : vector<32x16xi32>
    %26 = arith.select %25, %0, %3 : vector<32x16xi1>, vector<32x16xf32>
    %c16_i32_5 = arith.constant 16 : i32
    %c0_i32_6 = arith.constant 0 : i32
    %27 = arith.cmpi eq, %c16_i32_5, %c0_i32_6 : i32
    %c1_i32_7 = arith.constant 1 : i32
    %28 = arith.select %27, %c1_i32_7, %c16_i32_5 : i32
    %29 = vector.broadcast %28 : i32 to vector<32x16xi32>
    %30 = arith.remsi %7, %29 : vector<32x16xi32>
    %c0_i32_8 = arith.constant 0 : i32
    %31 = vector.broadcast %c0_i32_8 : i32 to vector<32x16xi32>
    %32 = arith.cmpi ne, %30, %31 : vector<32x16xi32>
    %c0_i32_9 = arith.constant 0 : i32
    %33 = vector.broadcast %c0_i32_9 : i32 to vector<32x16xi32>
    %34 = arith.cmpi slt, %30, %33 : vector<32x16xi32>
    %c0_i32_10 = arith.constant 0 : i32
    %35 = arith.cmpi slt, %28, %c0_i32_10 : i32
    %36 = vector.broadcast %35 : i1 to vector<32x16xi1>
    %37 = vector.broadcast %36 : vector<32x16xi1> to vector<32x16xi1>
    %38 = arith.xori %34, %37 : vector<32x16xi1>
    %39 = arith.andi %38, %32 : vector<32x16xi1>
    %40 = vector.broadcast %28 : i32 to vector<32x16xi32>
    %41 = arith.addi %30, %40 : vector<32x16xi32>
    %42 = arith.select %39, %41, %30 : vector<32x16xi1>, vector<32x16xi32>
    %c15_i32 = arith.constant 15 : i32
    %43 = vector.broadcast %c15_i32 : i32 to vector<32x16xi32>
    %44 = arith.cmpi eq, %42, %43 : vector<32x16xi32>
    %45 = arith.select %44, %0, %6 : vector<32x16xi1>, vector<32x16xf32>
    %cst = arith.constant 7.500000e-01 : f32
    %46 = vector.broadcast %cst : f32 to vector<32x16xf32>
    %47 = arith.mulf %46, %0 : vector<32x16xf32>
    %cst_11 = arith.constant 2.500000e-01 : f32
    %48 = vector.broadcast %cst_11 : f32 to vector<32x16xf32>
    %49 = arith.mulf %48, %26 : vector<32x16xf32>
    %50 = arith.addf %47, %49 : vector<32x16xf32>
    %cst_12 = arith.constant 7.500000e-01 : f32
    %51 = vector.broadcast %cst_12 : f32 to vector<32x16xf32>
    %52 = arith.mulf %51, %0 : vector<32x16xf32>
    %cst_13 = arith.constant 2.500000e-01 : f32
    %53 = vector.broadcast %cst_13 : f32 to vector<32x16xf32>
    %54 = arith.mulf %53, %45 : vector<32x16xf32>
    %55 = arith.addf %52, %54 : vector<32x16xf32>
    %56 = tpu.concatenate %50, %55 in 1 : vector<32x16xf32>, vector<32x16xf32> -> vector<32x32xf32>
    %c0_14 = arith.constant 0 : index
    %c0_15 = arith.constant 0 : index
    %57 = vector.load %arg2[%c0_14, %c0_15] : memref<32x64xf32, #tpu.memory_space<vmem>>, vector<32x64xf32>
    %cst_16 = arith.constant dense<0.000000e+00> : vector<32x64xf32>
    %58 = tpu.matmul %56, %57, %cst_16 {dimension_numbers = #tpu.dot_dimension_numbers<[1], [0], [0], [1], [0, 0, 1, 1], [], []>} : vector<32x32xf32>, vector<32x64xf32>, vector<32x64xf32> -> vector<32x64xf32>
    %c0_17 = arith.constant 0 : index
    %c0_18 = arith.constant 0 : index
    %59 = vector.load %arg3[%c0_17, %c0_18] : memref<32x64xf32, #tpu.memory_space<vmem>>, vector<32x64xf32>
    tpu.vector_store %arg3[%c0_17, %c0_18], %58 {strides = array<i32>} : memref<32x64xf32, #tpu.memory_space<vmem>>, vector<32x64xf32>,
    return
  }
  func.func @transform_0(%arg0: i32) -> (i32, i32) {
    %c0_i32 = arith.constant 0 : i32
    %c0_i32_0 = arith.constant 0 : i32
    return %arg0, %c0_i32 : i32, i32
  }
  func.func @transform_1(%arg0: i32) -> (i32, i32) {
    %c0_i32 = arith.constant 0 : i32
    %c0_i32_0 = arith.constant 0 : i32
    %c0_i32_1 = arith.constant 0 : i32
    return %c0_i32, %c0_i32_0 : i32, i32
  }
  func.func @transform_2(%arg0: i32) -> (i32, i32) {
    %c0_i32 = arith.constant 0 : i32
    %c0_i32_0 = arith.constant 0 : i32
    return %arg0, %c0_i32 : i32, i32
  }
}

</mosaic_0001>

<bundles_post_ra>
// kernel: tpu_custom_call.1
= control target key start
LH: loop header
LB: loop body
LE: loop exit
PB: predicated region body
PF: predicated region fallthrough
CT: control target
= control target key end

     0   :  { %s458_s9 = smov 0   ;;  %s522_s0 = inlined_call_operand.vmem [shape: f32[128,16], index: 0, kind: input, shape index: {}]   ;;  %s523_s1 = inlined_call_operand.vmem [shape: f32[32,64], index: 1, kind: input, shape index: {}]   ;;  %s524_s2 = inlined_call_operand.vmem [shape: f32[128,64], index: 2, kind: output, shape index: {}]  }
   0x1 LB: > { %s398_s10 = sadd.s32 4294967295, %s440_s9   ;;  %p402_p0 = scmp.ge.s32.totalorder %s440_s9, 1  ;;  %s440_s9 = sphi %s458_s9, %s12_s9  }
   0x2   : > { %p113_p1 = scmp.lt.s32.totalorder %s440_s9, 5 }
   0x4   : > { %p114_p2 = pnand %p402_p0, %p113_p1 }
   0x5   : > { %s403_s11 = sshll.u32 (!%p114_p2), %s398_s10, 2  ;;  %s442_s22 = smov (!%p114_p2), 16  }
   0x6   : > { %117 = sbr.rel (%p114_p2) target bundleno = 281 (0x119), region = 28  ;;  %p136_p3 = scmp.lt.s32.totalorder (!%p114_p2), %s403_s11, 15 }
   0xb   : > { %v181_v0 = vlaneseq  ;;  %v294_v1 = vld [vmem:[%s523_s1 + $0x18] sm:$0xff]  ;;  %v293_v2 = vld [vmem:[%s523_s1 + $0x10] sm:$0xff]  ;;  %v292_v4 = vld [vmem:[%s523_s1 + $0x8] sm:$0xff]  ;;  %s530_s11 = smov (!%p136_p3, %s403_s11), 15  ;;  %vm155_vm0 = vcmask 1040384   ;;  %vm168_vm1 = vcmask 1046528  }
   0xc   : > { %414 = vmatpush.msra.mxu2 %v294_v1  ;;  %320 = vmatpush.msra.mxu0 %v294_v1  ;;  %s404_s18 = sshll.u32 %s530_s11, 3  ;;  %v291_v51 = vld [vmem:[%s523_s1] sm:$0xff]  ;;  %vm286_vm6 = vcmask 130048   ;;  %vm295_vm7 = vcmask 261120   ;;  %vm337_vm8 = vcmask 523264  }
   0xd   : > { %v182_v3 = vshrl.u32 %v181_v0, 7  ;;  %415 = vmatpush.msra.mxu3 %v294_v1  ;;  %413 = vmatpush.msra.mxu1 %v294_v1  ;;  %s139_s21 = scalar_lea.vmem %s522_s0, %s404_s18  ;;  %s145_s27 = scalar_lea.vmem %s524_s2, %s404_s18 }
   0xe   : > { %417 = vmatpush.msra.mxu2 %v293_v2  ;;  %321 = vmatpush.msra.mxu0 %v293_v2  ;;  %v149_v10 = vld [vmem:[%s139_s21 + $0x10] sm:$0xff]  ;;  %v150_v11 = vld [vmem:[%s139_s21 + $0x18] sm:$0xff]  ;;  %v148_v12 = vld [vmem:[%s139_s21 + $0x8] sm:$0xff] }
   0xf   : > { %v184_v5 = vadd.s32 16, %v182_v3  ;;  %v190_v6 = vand.u32 15, %v182_v3  ;;  %v185_v7 = vadd.s32 24, %v182_v3  ;;  %v183_v8 = vadd.s32 8, %v182_v3  ;;  %418 = vmatpush.msra.mxu3 %v293_v2  ;;  %416 = vmatpush.msra.mxu1 %v293_v2  ;;  %v147_v20 = vld [vmem:[%s139_s21] sm:$0xff] }
  0x10   : > { %420 = vmatpush.msra.mxu2 %v292_v4  ;;  %322 = vmatpush.msra.mxu0 %v292_v4  ;;  %v172_v16 = vrot.slane %v149_v10, 1  ;;  %v174_v17 = vrot.slane %v150_v11, 1  ;;  %v252_v19 = vmul.f32 0.75, %v149_v10  ;;  %v157_v21 = vrot.slane %v148_v12, 7 }
  0x11   : > { %v204_v9 = vand.u32 15, %v184_v5  ;;  %421 = vmatpush.msra.mxu3 %v292_v4  ;;  %419 = vmatpush.msra.mxu1 %v292_v4  ;;  %vm483_vm2 = vcmp.eq.s32.totalorder %v190_v6, 0  ;;  %v211_v14 = vand.u32 15, %v185_v7  ;;  %v197_v15 = vand.u32 15, %v183_v8 }
  0x12   : > { %v159_v22 = vrot.slane %v149_v10, 7  ;;  %v169_v23 = vrot.slane %v147_v20, 1  ;;  %v170_v24 = vrot.slane %v148_v12, 1  ;;  %v175_v25 = vsel %vm168_vm1, %v172_v16, %v174_v17  ;;  %423 = vmatpush.msra.mxu2 %v291_v51  ;;  %323 = vmatpush.msra.mxu0 %v291_v51 }
  0x13   : > { %vm487_vm3 = vcmp.eq.s32.totalorder %v204_v9, 0  ;;  %v250_v26 = vmul.f32 0.75, %v147_v20  ;;  %v156_v27 = vrot.slane %v147_v20, 7  ;;  %v180_v28 = vsel %vm168_vm1, %v174_v17, %v150_v11  ;;  %424 = vmatpush.msra.mxu3 %v291_v51  ;;  %422 = vmatpush.msra.mxu1 %v291_v51 }
  0x14   : > { %v264_v29 = vmul.f32 0.25, %v175_v25  ;;  %v160_v30 = vsel %vm155_vm0, %v157_v21, %v159_v22  ;;  %v171_v31 = vsel %vm168_vm1, %v169_v23, %v170_v24  ;;  %vm245_vm4 = vcmp.eq.s32.totalorder %v211_v14, 15 }
  0x15   : > { %v240_v32 = vsel %vm487_vm3, %v149_v10, %v160_v30  ;;  %v262_v33 = vmul.f32 0.25, %v171_v31  ;;  %v167_v34 = vsel %vm155_vm0, %v147_v20, %v156_v27  ;;  %v249_v35 = vsel %vm245_vm4, %v150_v11, %v180_v28 }
  0x16   : > { %v268_v36 = vadd.f32 %v264_v29, %v252_v19  ;;  %v256_v37 = vmul.f32 0.25, %v240_v32  ;;  %v238_v38 = vsel %vm483_vm2, %v147_v20, %v167_v34  ;;  %v173_v41 = vsel %vm168_vm1, %v170_v24, %v172_v16 }
  0x17   : > { %v266_v39 = vadd.f32 %v262_v33, %v250_v26  ;;  %v254_v40 = vmul.f32 0.25, %v238_v38  ;;  %v253_v43 = vmul.f32 0.75, %v150_v11  ;;  %v265_v44 = vmul.f32 0.25, %v249_v35 }
  0x18   : > { %278 = vrot.lane.b32.xlu0 %v268_v36, %s442_s22  ;;  %v260_v42 = vadd.f32 %v256_v37, %v252_v19  ;;  %vm243_vm5 = vcmp.eq.s32.totalorder %v197_v15, 15  ;;  %v251_v47 = vmul.f32 0.75, %v148_v12  ;;  %v158_v52 = vsel %vm155_vm0, %v156_v27, %v157_v21 }
  0x19   : > { %274 = vrot.lane.b32.xlu1 %v266_v39, %s442_s22  ;;  %v258_v45 = vadd.f32 %v254_v40, %v250_v26  ;;  %v247_v46 = vsel %vm243_vm5, %v148_v12, %v173_v41  ;;  %v269_v49 = vadd.f32 %v265_v44, %v253_v43  ;;  %v161_v53 = vrot.slane %v150_v11, 7 }
  0x1a   : > { %v263_v48 = vmul.f32 0.25, %v247_v46  ;;  %v255_v60 = vmul.f32 0.25, %v158_v52 }
  0x1b   : > { %v162_v54 = vsel %vm155_vm0, %v159_v22, %v161_v53 }
  0x1c   : > { %v267_v50 = vadd.f32 %v263_v48, %v251_v47  ;;  %v257_v58 = vmul.f32 0.25, %v162_v54  ;;  %v259_v62 = vadd.f32 %v255_v60, %v251_v47 }
  0x1e   : > { %v261_v61 = vadd.f32 %v257_v58, %v253_v43 }
  0x20   : > { %280 = vrot.lane.b32.xlu0 %v269_v49, %s442_s22 }
  0x21   : > { %276 = vrot.lane.b32.xlu1 %v267_v50, %s442_s22 }
  0x8a   : > { %v279_v55 = vpop.permute.xlu0 %278 }
  0x8b   : > { %v289_v56 = vsel %vm286_vm6, %v260_v42, %v279_v55  ;;  %v275_v57 = vpop.permute.xlu1 %274 }
  0x8c   : > { %409 = vmatmul.msk.f32.vlgmr.msra.gmra.mxu2 %vm295_vm7, %v289_v56  ;;  %v287_v59 = vsel %vm286_vm6, %v258_v45, %v275_v57 }
  0x8d   : > { %407 = vmatmul.msk.f32.vlgmr.msra.gmra.mxu0 %vm295_vm7, %v287_v59 }
  0x92   : > { %v281_v63 = vpop.permute.xlu0 %280 }
  0x93   : > { %v290_v0 = vsel %vm286_vm6, %v261_v61, %v281_v63  ;;  %v277_v1 = vpop.permute.xlu1 %276 }
  0x94   : > { %410 = vmatmul.msk.f32.vlgmr.msra.gmra.mxu3 %vm295_vm7, %v290_v0  ;;  %v288_v2 = vsel %vm286_vm6, %v259_v62, %v277_v1 }
  0x95   : > { %408 = vmatmul.msk.f32.vlgmr.msra.gmra.mxu1 %vm295_vm7, %v288_v2 }
 0x10a   : > { %v325_v3 = vpop.f32.mrf.mxu0 }
 0x10b   : > { %338 = vst.msk [vmem:[%s145_s27] sm:$0xff] %vm337_vm8, %v325_v3 }
 0x10f   : > { %v331_v4 = vpop.f32.mrf.mxu2 }
 0x110   : > { %340 = vst.msk [vmem:[%s145_s27 + $0x10] sm:$0xff] %vm337_vm8, %v331_v4 }
 0x112   : > { %v328_v5 = vpop.f32.mrf.mxu1 }
 0x113   : > { %339 = vst.msk [vmem:[%s145_s27 + $0x8] sm:$0xff] %vm337_vm8, %v328_v5 }
 0x117   : > { %v334_v6 = vpop.f32.mrf.mxu3 }
 0x118   : > { %341 = vst.msk [vmem:[%s145_s27 + $0x18] sm:$0xff] %vm337_vm8, %v334_v6 }
 0x119 PF: > { %s12_s9 = sadd.s32 1, %s440_s9  }
 0x11a   : > { %p9_p4 = scmp.ge.s32.totalorder %s12_s9, 6  }
 0x11c   :  { %11 = sbr.rel (!%p9_p4) target bundleno = 1 (0x1), region = 58 }

</bundles_post_ra>
